<compile_context>
chip_gen: v7x
topology: tpu7x:2x2x1
jax: 0.10.0
libtpu: 0.0.40
codegen_flags: <defaults>
</compile_context>

<pallas_src>
import functools

import jax
import jax.numpy as jnp
import numpy as np
from jax.experimental import pallas as pl
from jax.experimental.pallas import tpu as pltpu

LANE = 128


def _round_up(x, m):
    return ((x + m - 1) // m) * m


# ----------------------------------------------------------------------------
# Fused kernel: whole post-im2col forward for one batch block.
# ----------------------------------------------------------------------------
def _fused_cnndqn_kernel(p1_ref, w1_ref, b1_ref, w2_ref, b2_ref,
                         w3_ref, b3_ref, w4_ref, b4_ref, o_ref, *,
                         bb, ho1p, wo1p, s2, kh2, kw2, ho2, wo2, c1, c2):
    f32 = jnp.float32
    cdt = w1_ref.dtype
    npos1p = ho1p * wo1p
    npos2 = ho2 * wo2
    hb = ho1p // s2
    wb = wo1p // s2

    # ---- conv1: one batched matmul over the whole (position, batch) block.
    k1p = p1_ref.shape[-1]
    p1 = p1_ref[...].reshape(npos1p * bb, k1p)            # rows (h, w, b)
    a1 = jnp.dot(p1, w1_ref[...], preferred_element_type=f32) + b1_ref[...]
    a1 = jnp.maximum(a1, 0.0).astype(cdt)                 # (npos1p*bb, c1)

    # ---- conv2: tap-accumulate.  Position-major/batch-minor rows make every
    # tap a contiguous, sublane-aligned block of bb rows; the reshapes below
    # only regroup rows (lane dim c1 untouched) and all slices are static
    # outer-dim slices.  Spatially padded conv1 rows are never read.
    a1h = a1.reshape(hb, s2, wo1p * bb, c1)
    acc = jnp.zeros((npos2 * bb, c2), f32)
    for di in range(kh2):
        rows = a1h[di // s2: di // s2 + ho2, di % s2]     # (ho2, wo1p*bb, c1)
        rows = rows.reshape(ho2, wb, s2, bb, c1)
        for dj in range(kw2):
            tap = rows[:, dj // s2: dj // s2 + wo2, dj % s2]  # (ho2,wo2,bb,c1)
            t = di * kw2 + dj
            acc = acc + jnp.dot(tap.reshape(npos2 * bb, c1),
                                w2_ref[t * c1:(t + 1) * c1, :],
                                preferred_element_type=f32)
    a2 = jnp.maximum(acc + b2_ref[...], 0.0).astype(cdt)  # rows (oh, ow, b)

    # ---- fc1: PyTorch's (C,H,W)-major flatten is absorbed into w3's row
    # order; splitting K by conv2 position keeps every slice contiguous and
    # bb-aligned (no in-kernel flatten relayout).
    # TODO(synk): for large npos2 (e.g. 84x84 Atari -> 81 positions) group
    #   positions to raise the per-matmul K toward the MXU row count.
    hid = w3_ref.shape[-1]
    h = jnp.zeros((bb, hid), f32)
    for p in range(npos2):
        h = h + jnp.dot(a2[p * bb:(p + 1) * bb, :],
                        w3_ref[p * c2:(p + 1) * c2, :],
                        preferred_element_type=f32)
    h = jnp.maximum(h + b3_ref[...], 0.0).astype(cdt)     # (bb, 512)

    # ---- fc2: lane-dense, sublane-full (bb, 128) store; the (B, num_actions)
    # slice is taken outside the kernel.
    q = jnp.dot(h, w4_ref[...], preferred_element_type=f32) + b4_ref[...]
    o_ref[...] = q.astype(o_ref.dtype)


# ----------------------------------------------------------------------------
# One-time host-side weight repack.
# ----------------------------------------------------------------------------
def _pack_params(params, input_shape, num_actions, *, dtype=jnp.float32):
    C, H, W = input_shape
    kh1 = kw1 = 8
    s1 = 4
    kh2 = kw2 = 3
    s2 = 2
    ho1 = (H - kh1) // s1 + 1
    wo1 = (W - kw1) // s1 + 1
    ho2 = (ho1 - kh2) // s2 + 1
    wo2 = (wo1 - kw2) // s2 + 1
    C1, C2, HID = 32, 64, 512
    ho1p = _round_up(ho1, s2)       # conv1 spatial padded so the parity view
    wo1p = _round_up(wo1, s2)       # factors exactly; padded rows never read.
    k1 = C * kh1 * kw1
    k1p = _round_up(k1, LANE)
    ap = _round_up(num_actions, LANE)

    assert params["fc1_w"].shape[0] == C2 * ho2 * wo2

    # conv1: OIHW -> (k1p, 32); rows ordered (c, i, j) = host patch order.
    # Channel dim stays 32 (VMEM intermediate, no lane padding needed).
    w1 = params["conv1_w"].astype(dtype).reshape(C1, k1).T
    w1 = jnp.pad(w1, ((0, k1p - k1), (0, 0)))
    b1 = params["conv1_b"].astype(dtype).reshape(1, C1)

    # conv2: OIHW -> dense (kh2*kw2*32, 64), row blocks ordered (di, dj) and
    # channel-minor, matching the kernel's per-tap K=32 matmuls (no zero rows).
    w2 = jnp.transpose(params["conv2_w"].astype(dtype), (2, 3, 1, 0))
    w2 = w2.reshape(kh2 * kw2 * C1, C2)
    b2 = params["conv2_b"].astype(dtype).reshape(1, C2)

    # fc1: absorb PyTorch's (C,H,W)-major flatten: rows reordered to
    # (position, channel) so the kernel can split K by conv2 position.
    w3 = params["fc1_w"].astype(dtype).reshape(C2, ho2 * wo2, HID)
    w3 = jnp.transpose(w3, (1, 0, 2)).reshape(ho2 * wo2 * C2, HID)
    b3 = params["fc1_b"].astype(dtype).reshape(1, HID)

    # fc2: pad actions to a full 128-lane store.
    w4 = jnp.pad(params["fc2_w"].astype(dtype), ((0, 0), (0, ap - num_actions)))
    b4 = jnp.pad(params["fc2_b"].astype(dtype),
                 (0, ap - num_actions)).reshape(1, ap)

    geom = dict(kh1=kh1, kw1=kw1, s1=s1, kh2=kh2, kw2=kw2, s2=s2,
                ho1=ho1, wo1=wo1, ho1p=ho1p, wo1p=wo1p, ho2=ho2, wo2=wo2,
                k1=k1, k1p=k1p, c1=C1, c2=C2, ap=ap, hid=HID,
                num_actions=num_actions)
    packed = dict(w1=w1, b1=b1, w2=w2, b2=b2, w3=w3, b3=b3, w4=w4, b4=b4)
    return packed, geom


# ----------------------------------------------------------------------------
# Forward: host glue (conv1 im2col, layout/padding) + one fused pallas_call.
# ----------------------------------------------------------------------------
def cnndqn_forward(packed, geom, x, *, batch_block=64):
    g = geom
    B = x.shape[0]
    cdt = packed["w1"].dtype

    # conv1 im2col in one fused XLA op; feature order (c, i, j), channels-last.
    patches = jax.lax.conv_general_dilated_patches(
        x.astype(cdt),
        filter_shape=(g["kh1"], g["kw1"]),
        window_strides=(g["s1"], g["s1"]),
        padding="VALID",
        dimension_numbers=("NCHW", "OIHW", "NHWC"))       # (B, ho1, wo1, k1)

    # Batch block: multiple of 8 (sublane-full output blocks), default 64.
    bb = max(8, min(_round_up(batch_block, 8), _round_up(B, 8)))
    b_pad = _round_up(B, bb)

    # Pad batch / conv1 spatial / K, then go position-major, batch-minor so
    # every in-kernel slice is a contiguous, sublane-aligned block of bb rows.
    patches = jnp.pad(
        patches,
        ((0, b_pad - B), (0, g["ho1p"] - g["ho1"]),
         (0, g["wo1p"] - g["wo1"]), (0, g["k1p"] - g["k1"])))
    npos1p = g["ho1p"] * g["wo1p"]
    patches = jnp.transpose(patches, (1, 2, 0, 3)).reshape(
        npos1p, b_pad, g["k1p"])

    kernel = functools.partial(
        _fused_cnndqn_kernel, bb=bb, ho1p=g["ho1p"], wo1p=g["wo1p"],
        s2=g["s2"], kh2=g["kh2"], kw2=g["kw2"], ho2=g["ho2"], wo2=g["wo2"],
        c1=g["c1"], c2=g["c2"])

    const = lambda i: (0, 0)
    flops = int(2 * b_pad * (
        npos1p * g["k1p"] * g["c1"]
        + g["ho2"] * g["wo2"] * g["kh2"] * g["kw2"] * g["c1"] * g["c2"]
        + g["ho2"] * g["wo2"] * g["c2"] * g["hid"]
        + g["hid"] * g["ap"]))
    w_bytes = sum(int(np.prod(packed[k].shape)) * packed[k].dtype.itemsize
                  for k in ("w1", "b1", "w2", "b2", "w3", "b3", "w4", "b4"))
    bytes_accessed = int(patches.size * patches.dtype.itemsize
                         + 4 * b_pad * g["ap"] + w_bytes)

    q_pad = pl.pallas_call(
        kernel,
        out_shape=jax.ShapeDtypeStruct((b_pad, g["ap"]), jnp.float32),
        grid=(b_pad // bb,),
        in_specs=[
            pl.BlockSpec((npos1p, bb, g["k1p"]), lambda i: (0, i, 0)),
            pl.BlockSpec(packed["w1"].shape, const),
            pl.BlockSpec(packed["b1"].shape, const),
            pl.BlockSpec(packed["w2"].shape, const),
            pl.BlockSpec(packed["b2"].shape, const),
            pl.BlockSpec(packed["w3"].shape, const),
            pl.BlockSpec(packed["b3"].shape, const),
            pl.BlockSpec(packed["w4"].shape, const),
            pl.BlockSpec(packed["b4"].shape, const),
        ],
        out_specs=pl.BlockSpec((bb, g["ap"]), lambda i: (i, 0)),
        compiler_params=pltpu.CompilerParams(
            dimension_semantics=("parallel",),
            vmem_limit_bytes=32 * 1024 * 1024),
        cost_estimate=pl.CostEstimate(
            flops=flops, transcendentals=0, bytes_accessed=bytes_accessed),
    )(patches, packed["w1"], packed["b1"], packed["w2"], packed["b2"],
      packed["w3"], packed["b3"], packed["w4"], packed["b4"])

    return q_pad[:B, :g["num_actions"]]


# ----------------------------------------------------------------------------
# Parameters (PyTorch-like layout) + pure-JAX reference.
# ----------------------------------------------------------------------------
def init_cnndqn_params(key, input_shape, num_actions):
    C, H, W = input_shape
    h1 = (H - 8) // 4 + 1
    w1 = (W - 8) // 4 + 1
    h2 = (h1 - 3) // 2 + 1
    w2 = (w1 - 3) // 2 + 1
    feat = 64 * h2 * w2

    ks = jax.random.split(key, 8)
    scale = 0.05
    params = {
        "conv1_w": scale * jax.random.normal(ks[0], (32, C, 8, 8), jnp.float32),
        "conv1_b": scale * jax.random.normal(ks[1], (32,), jnp.float32),
        "conv2_w": scale * jax.random.normal(ks[2], (64, 32, 3, 3), jnp.float32),
        "conv2_b": scale * jax.random.normal(ks[3], (64,), jnp.float32),
        "fc1_w": scale * jax.random.normal(ks[4], (feat, 512), jnp.float32),
        "fc1_b": scale * jax.random.normal(ks[5], (512,), jnp.float32),
        "fc2_w": scale * jax.random.normal(ks[6], (512, num_actions), jnp.float32),
        "fc2_b": scale * jax.random.normal(ks[7], (num_actions,), jnp.float32),
    }
    return params, feat


def reference_forward(params, x):
    dn = ("NCHW", "OIHW", "NCHW")
    prec = jax.lax.Precision.HIGHEST
    h = jax.lax.conv_general_dilated(x, params["conv1_w"], (4, 4), "VALID",
                                     dimension_numbers=dn, precision=prec)
    h = jnp.maximum(h + params["conv1_b"][None, :, None, None], 0.0)
    h = jax.lax.conv_general_dilated(h, params["conv2_w"], (2, 2), "VALID",
                                     dimension_numbers=dn, precision=prec)
    h = jnp.maximum(h + params["conv2_b"][None, :, None, None], 0.0)
    h = h.reshape(x.shape[0], -1)
    h = jnp.maximum(jnp.dot(h, params["fc1_w"], precision=prec)
                    + params["fc1_b"], 0.0)
    return jnp.dot(h, params["fc2_w"], precision=prec) + params["fc2_b"]


if __name__ == "__main__":
    def _run_case(case_key, input_shape, num_actions, batch):
        k_param, k_x = jax.random.split(case_key)
        params, _ = init_cnndqn_params(k_param, input_shape, num_actions)
        x = jax.random.normal(k_x, (batch,) + input_shape, jnp.float32)

        packed, geom = _pack_params(params, input_shape, num_actions)
        fwd = jax.jit(lambda pk, xx: cnndqn_forward(pk, geom, xx))

        q = jax.block_until_ready(fwd(packed, x))
        assert q.shape == (batch, num_actions), q.shape

        q_ref = jax.block_until_ready(reference_forward(params, x))
        # Tolerance leaves headroom for MXU f32 multi-pass vs XLA HIGHEST
        # rounding differences; layout/indexing bugs would be O(1e-2) or more.
        np.testing.assert_allclose(np.asarray(q), np.asarray(q_ref),
                                   rtol=1e-3, atol=1e-3)

    key = jax.random.PRNGKey(0)
    k_case1, k_case2 = jax.random.split(key)

    # Case 1: conv2 window covers the whole conv1 map (ho2 = wo2 = 1).
    _run_case(k_case1, (4, 16, 16), 6, 2)
    # Case 2: multi-position conv2 output (odd conv1 extent -> spatial pad,
    # ho2 = wo2 = 2) exercising the general tap-accumulate / split-K paths.
    _run_case(k_case2, (4, 24, 24), 5, 4)

    print("KERNEL_OK")
</pallas_src>

<mosaic_0001>
module attributes {stable_mosaic.version = 11 : i64} {
  func.func @_fused_cnndqn_kernel(%arg0: i32, %arg1: memref<16x8x256xf32, #tpu.memory_space<vmem>>, %arg2: memref<256x32xf32, #tpu.memory_space<vmem>>, %arg3: memref<1x32xf32, #tpu.memory_space<vmem>>, %arg4: memref<288x64xf32, #tpu.memory_space<vmem>>, %arg5: memref<1x64xf32, #tpu.memory_space<vmem>>, %arg6: memref<64x512xf32, #tpu.memory_space<vmem>>, %arg7: memref<1x512xf32, #tpu.memory_space<vmem>>, %arg8: memref<512x128xf32, #tpu.memory_space<vmem>>, %arg9: memref<1x128xf32, #tpu.memory_space<vmem>>, %arg10: memref<8x128xf32, #tpu.memory_space<vmem>>) attributes {dimension_semantics = [#tpu.dimension_semantics<parallel>], iteration_bounds = array<i64: 1>, scalar_prefetch = 0 : i64, scratch_operands = 0 : i64, tpu.core_type = #tpu.core_type<tc>, window_params = [{transform_indices = @transform_0, window_bounds = array<i64: 16, 8, 256>}, {pipeline_mode = #tpu.pipeline_mode<synchronous>, transform_indices = @transform_1, window_bounds = array<i64: 256, 32>}, {pipeline_mode = #tpu.pipeline_mode<synchronous>, transform_indices = @transform_2, window_bounds = array<i64: 1, 32>}, {pipeline_mode = #tpu.pipeline_mode<synchronous>, transform_indices = @transform_3, window_bounds = array<i64: 288, 64>}, {pipeline_mode = #tpu.pipeline_mode<synchronous>, transform_indices = @transform_4, window_bounds = array<i64: 1, 64>}, {pipeline_mode = #tpu.pipeline_mode<synchronous>, transform_indices = @transform_5, window_bounds = array<i64: 64, 512>}, {pipeline_mode = #tpu.pipeline_mode<synchronous>, transform_indices = @transform_6, window_bounds = array<i64: 1, 512>}, {pipeline_mode = #tpu.pipeline_mode<synchronous>, transform_indices = @transform_7, window_bounds = array<i64: 512, 128>}, {pipeline_mode = #tpu.pipeline_mode<synchronous>, transform_indices = @transform_8, window_bounds = array<i64: 1, 128>}, {transform_indices = @transform_9, window_bounds = array<i64: 8, 128>}]} {
    %c0 = arith.constant 0 : index
    %c0_0 = arith.constant 0 : index
    %c0_1 = arith.constant 0 : index
    %0 = vector.load %arg1[%c0, %c0_0, %c0_1] : memref<16x8x256xf32, #tpu.memory_space<vmem>>, vector<16x8x256xf32>
    %1 = vector.shape_cast %0 : vector<16x8x256xf32> to vector<128x256xf32>
    %c0_2 = arith.constant 0 : index
    %c0_3 = arith.constant 0 : index
    %2 = vector.load %arg2[%c0_2, %c0_3] : memref<256x32xf32, #tpu.memory_space<vmem>>, vector<256x32xf32>
    %cst = arith.constant dense<0.000000e+00> : vector<128x32xf32>
    %3 = tpu.matmul %1, %2, %cst {dimension_numbers = #tpu.dot_dimension_numbers<[1], [0], [0], [1], [0, 0, 1, 1], [], []>} : vector<128x256xf32>, vector<256x32xf32>, vector<128x32xf32> -> vector<128x32xf32>
    %c0_4 = arith.constant 0 : index
    %c0_5 = arith.constant 0 : index
    %4 = vector.load %arg3[%c0_4, %c0_5] : memref<1x32xf32, #tpu.memory_space<vmem>>, vector<1x32xf32>
    %5 = vector.broadcast %4 : vector<1x32xf32> to vector<128x32xf32>
    %6 = arith.addf %3, %5 : vector<128x32xf32>
    %cst_6 = arith.constant 0.000000e+00 : f32
    %7 = vector.broadcast %cst_6 : f32 to vector<128x32xf32>
    %8 = arith.maximumf %6, %7 : vector<128x32xf32>
    %9 = vector.shape_cast %8 : vector<128x32xf32> to vector<2x2x32x32xf32>
    %cst_7 = arith.constant 0.000000e+00 : f32
    %10 = vector.broadcast %cst_7 : f32 to vector<8x64xf32>
    %11 = vector.extract_strided_slice %9 {offsets = [0, 0, 0, 0], sizes = [1, 1, 32, 32], strides = [1, 1, 1, 1]} : vector<2x2x32x32xf32> to vector<1x1x32x32xf32>
    %12 = vector.shape_cast %11 : vector<1x1x32x32xf32> to vector<1x32x32xf32>
    %13 = vector.shape_cast %12 : vector<1x32x32xf32> to vector<1x2x2x8x32xf32>
    %14 = vector.extract_strided_slice %13 {offsets = [0, 0, 0, 0, 0], sizes = [1, 1, 1, 8, 32], strides = [1, 1, 1, 1, 1]} : vector<1x2x2x8x32xf32> to vector<1x1x1x8x32xf32>
    %15 = vector.shape_cast %14 : vector<1x1x1x8x32xf32> to vector<1x1x8x32xf32>
    %16 = vector.shape_cast %15 : vector<1x1x8x32xf32> to vector<8x32xf32>
    %c0_8 = arith.constant 0 : index
    %c0_9 = arith.constant 0 : index
    %17 = vector.load %arg4[%c0_8, %c0_9] : memref<288x64xf32, #tpu.memory_space<vmem>>, vector<32x64xf32>
    %cst_10 = arith.constant dense<0.000000e+00> : vector<8x64xf32>
    %18 = tpu.matmul %16, %17, %cst_10 {dimension_numbers = #tpu.dot_dimension_numbers<[1], [0], [0], [1], [0, 0, 1, 1], [], []>} : vector<8x32xf32>, vector<32x64xf32>, vector<8x64xf32> -> vector<8x64xf32>
    %19 = arith.addf %10, %18 : vector<8x64xf32>
    %20 = vector.extract_strided_slice %13 {offsets = [0, 0, 1, 0, 0], sizes = [1, 1, 1, 8, 32], strides = [1, 1, 1, 1, 1]} : vector<1x2x2x8x32xf32> to vector<1x1x1x8x32xf32>
    %21 = vector.shape_cast %20 : vector<1x1x1x8x32xf32> to vector<1x1x8x32xf32>
    %22 = vector.shape_cast %21 : vector<1x1x8x32xf32> to vector<8x32xf32>
    %c32 = arith.constant 32 : index
    %c0_11 = arith.constant 0 : index
    %23 = vector.load %arg4[%c32, %c0_11] : memref<288x64xf32, #tpu.memory_space<vmem>>, vector<32x64xf32>
    %cst_12 = arith.constant dense<0.000000e+00> : vector<8x64xf32>
    %24 = tpu.matmul %22, %23, %cst_12 {dimension_numbers = #tpu.dot_dimension_numbers<[1], [0], [0], [1], [0, 0, 1, 1], [], []>} : vector<8x32xf32>, vector<32x64xf32>, vector<8x64xf32> -> vector<8x64xf32>
    %25 = arith.addf %19, %24 : vector<8x64xf32>
    %26 = vector.extract_strided_slice %13 {offsets = [0, 1, 0, 0, 0], sizes = [1, 1, 1, 8, 32], strides = [1, 1, 1, 1, 1]} : vector<1x2x2x8x32xf32> to vector<1x1x1x8x32xf32>
    %27 = vector.shape_cast %26 : vector<1x1x1x8x32xf32> to vector<1x1x8x32xf32>
    %28 = vector.shape_cast %27 : vector<1x1x8x32xf32> to vector<8x32xf32>
    %c64 = arith.constant 64 : index
    %c0_13 = arith.constant 0 : index
    %29 = vector.load %arg4[%c64, %c0_13] : memref<288x64xf32, #tpu.memory_space<vmem>>, vector<32x64xf32>
    %cst_14 = arith.constant dense<0.000000e+00> : vector<8x64xf32>
    %30 = tpu.matmul %28, %29, %cst_14 {dimension_numbers = #tpu.dot_dimension_numbers<[1], [0], [0], [1], [0, 0, 1, 1], [], []>} : vector<8x32xf32>, vector<32x64xf32>, vector<8x64xf32> -> vector<8x64xf32>
    %31 = arith.addf %25, %30 : vector<8x64xf32>
    %32 = vector.extract_strided_slice %9 {offsets = [0, 1, 0, 0], sizes = [1, 1, 32, 32], strides = [1, 1, 1, 1]} : vector<2x2x32x32xf32> to vector<1x1x32x32xf32>
    %33 = vector.shape_cast %32 : vector<1x1x32x32xf32> to vector<1x32x32xf32>
    %34 = vector.shape_cast %33 : vector<1x32x32xf32> to vector<1x2x2x8x32xf32>
    %35 = vector.extract_strided_slice %34 {offsets = [0, 0, 0, 0, 0], sizes = [1, 1, 1, 8, 32], strides = [1, 1, 1, 1, 1]} : vector<1x2x2x8x32xf32> to vector<1x1x1x8x32xf32>
    %36 = vector.shape_cast %35 : vector<1x1x1x8x32xf32> to vector<1x1x8x32xf32>
    %37 = vector.shape_cast %36 : vector<1x1x8x32xf32> to vector<8x32xf32>
    %c96 = arith.constant 96 : index
    %c0_15 = arith.constant 0 : index
    %38 = vector.load %arg4[%c96, %c0_15] : memref<288x64xf32, #tpu.memory_space<vmem>>, vector<32x64xf32>
    %cst_16 = arith.constant dense<0.000000e+00> : vector<8x64xf32>
    %39 = tpu.matmul %37, %38, %cst_16 {dimension_numbers = #tpu.dot_dimension_numbers<[1], [0], [0], [1], [0, 0, 1, 1], [], []>} : vector<8x32xf32>, vector<32x64xf32>, vector<8x64xf32> -> vector<8x64xf32>
    %40 = arith.addf %31, %39 : vector<8x64xf32>
    %41 = vector.extract_strided_slice %34 {offsets = [0, 0, 1, 0, 0], sizes = [1, 1, 1, 8, 32], strides = [1, 1, 1, 1, 1]} : vector<1x2x2x8x32xf32> to vector<1x1x1x8x32xf32>
    %42 = vector.shape_cast %41 : vector<1x1x1x8x32xf32> to vector<1x1x8x32xf32>
    %43 = vector.shape_cast %42 : vector<1x1x8x32xf32> to vector<8x32xf32>
    %c128 = arith.constant 128 : index
    %c0_17 = arith.constant 0 : index
    %44 = vector.load %arg4[%c128, %c0_17] : memref<288x64xf32, #tpu.memory_space<vmem>>, vector<32x64xf32>
    %cst_18 = arith.constant dense<0.000000e+00> : vector<8x64xf32>
    %45 = tpu.matmul %43, %44, %cst_18 {dimension_numbers = #tpu.dot_dimension_numbers<[1], [0], [0], [1], [0, 0, 1, 1], [], []>} : vector<8x32xf32>, vector<32x64xf32>, vector<8x64xf32> -> vector<8x64xf32>
    %46 = arith.addf %40, %45 : vector<8x64xf32>
    %47 = vector.extract_strided_slice %34 {offsets = [0, 1, 0, 0, 0], sizes = [1, 1, 1, 8, 32], strides = [1, 1, 1, 1, 1]} : vector<1x2x2x8x32xf32> to vector<1x1x1x8x32xf32>
    %48 = vector.shape_cast %47 : vector<1x1x1x8x32xf32> to vector<1x1x8x32xf32>
    %49 = vector.shape_cast %48 : vector<1x1x8x32xf32> to vector<8x32xf32>
    %c160 = arith.constant 160 : index
    %c0_19 = arith.constant 0 : index
    %50 = vector.load %arg4[%c160, %c0_19] : memref<288x64xf32, #tpu.memory_space<vmem>>, vector<32x64xf32>
    %cst_20 = arith.constant dense<0.000000e+00> : vector<8x64xf32>
    %51 = tpu.matmul %49, %50, %cst_20 {dimension_numbers = #tpu.dot_dimension_numbers<[1], [0], [0], [1], [0, 0, 1, 1], [], []>} : vector<8x32xf32>, vector<32x64xf32>, vector<8x64xf32> -> vector<8x64xf32>
    %52 = arith.addf %46, %51 : vector<8x64xf32>
    %53 = vector.extract_strided_slice %9 {offsets = [1, 0, 0, 0], sizes = [1, 1, 32, 32], strides = [1, 1, 1, 1]} : vector<2x2x32x32xf32> to vector<1x1x32x32xf32>
    %54 = vector.shape_cast %53 : vector<1x1x32x32xf32> to vector<1x32x32xf32>
    %55 = vector.shape_cast %54 : vector<1x32x32xf32> to vector<1x2x2x8x32xf32>
    %56 = vector.extract_strided_slice %55 {offsets = [0, 0, 0, 0, 0], sizes = [1, 1, 1, 8, 32], strides = [1, 1, 1, 1, 1]} : vector<1x2x2x8x32xf32> to vector<1x1x1x8x32xf32>
    %57 = vector.shape_cast %56 : vector<1x1x1x8x32xf32> to vector<1x1x8x32xf32>
    %58 = vector.shape_cast %57 : vector<1x1x8x32xf32> to vector<8x32xf32>
    %c192 = arith.constant 192 : index
    %c0_21 = arith.constant 0 : index
    %59 = vector.load %arg4[%c192, %c0_21] : memref<288x64xf32, #tpu.memory_space<vmem>>, vector<32x64xf32>
    %cst_22 = arith.constant dense<0.000000e+00> : vector<8x64xf32>
    %60 = tpu.matmul %58, %59, %cst_22 {dimension_numbers = #tpu.dot_dimension_numbers<[1], [0], [0], [1], [0, 0, 1, 1], [], []>} : vector<8x32xf32>, vector<32x64xf32>, vector<8x64xf32> -> vector<8x64xf32>
    %61 = arith.addf %52, %60 : vector<8x64xf32>
    %62 = vector.extract_strided_slice %55 {offsets = [0, 0, 1, 0, 0], sizes = [1, 1, 1, 8, 32], strides = [1, 1, 1, 1, 1]} : vector<1x2x2x8x32xf32> to vector<1x1x1x8x32xf32>
    %63 = vector.shape_cast %62 : vector<1x1x1x8x32xf32> to vector<1x1x8x32xf32>
    %64 = vector.shape_cast %63 : vector<1x1x8x32xf32> to vector<8x32xf32>
    %c224 = arith.constant 224 : index
    %c0_23 = arith.constant 0 : index
    %65 = vector.load %arg4[%c224, %c0_23] : memref<288x64xf32, #tpu.memory_space<vmem>>, vector<32x64xf32>
    %cst_24 = arith.constant dense<0.000000e+00> : vector<8x64xf32>
    %66 = tpu.matmul %64, %65, %cst_24 {dimension_numbers = #tpu.dot_dimension_numbers<[1], [0], [0], [1], [0, 0, 1, 1], [], []>} : vector<8x32xf32>, vector<32x64xf32>, vector<8x64xf32> -> vector<8x64xf32>
    %67 = arith.addf %61, %66 : vector<8x64xf32>
    %68 = vector.extract_strided_slice %55 {offsets = [0, 1, 0, 0, 0], sizes = [1, 1, 1, 8, 32], strides = [1, 1, 1, 1, 1]} : vector<1x2x2x8x32xf32> to vector<1x1x1x8x32xf32>
    %69 = vector.shape_cast %68 : vector<1x1x1x8x32xf32> to vector<1x1x8x32xf32>
    %70 = vector.shape_cast %69 : vector<1x1x8x32xf32> to vector<8x32xf32>
    %c256 = arith.constant 256 : index
    %c0_25 = arith.constant 0 : index
    %71 = vector.load %arg4[%c256, %c0_25] : memref<288x64xf32, #tpu.memory_space<vmem>>, vector<32x64xf32>
    %cst_26 = arith.constant dense<0.000000e+00> : vector<8x64xf32>
    %72 = tpu.matmul %70, %71, %cst_26 {dimension_numbers = #tpu.dot_dimension_numbers<[1], [0], [0], [1], [0, 0, 1, 1], [], []>} : vector<8x32xf32>, vector<32x64xf32>, vector<8x64xf32> -> vector<8x64xf32>
    %73 = arith.addf %67, %72 : vector<8x64xf32>
    %c0_27 = arith.constant 0 : index
    %c0_28 = arith.constant 0 : index
    %74 = vector.load %arg5[%c0_27, %c0_28] : memref<1x64xf32, #tpu.memory_space<vmem>>, vector<1x64xf32>
    %75 = vector.broadcast %74 : vector<1x64xf32> to vector<8x64xf32>
    %76 = arith.addf %73, %75 : vector<8x64xf32>
    %cst_29 = arith.constant 0.000000e+00 : f32
    %77 = vector.broadcast %cst_29 : f32 to vector<8x64xf32>
    %78 = arith.maximumf %76, %77 : vector<8x64xf32>
    %cst_30 = arith.constant 0.000000e+00 : f32
    %79 = vector.broadcast %cst_30 : f32 to vector<8x512xf32>
    %c0_31 = arith.constant 0 : index
    %c0_32 = arith.constant 0 : index
    %80 = vector.load %arg6[%c0_31, %c0_32] : memref<64x512xf32, #tpu.memory_space<vmem>>, vector<64x512xf32>
    %cst_33 = arith.constant dense<0.000000e+00> : vector<8x512xf32>
    %81 = tpu.matmul %78, %80, %cst_33 {dimension_numbers = #tpu.dot_dimension_numbers<[1], [0], [0], [1], [0, 0, 1, 1], [], []>} : vector<8x64xf32>, vector<64x512xf32>, vector<8x512xf32> -> vector<8x512xf32>
    %82 = arith.addf %79, %81 : vector<8x512xf32>
    %c0_34 = arith.constant 0 : index
    %c0_35 = arith.constant 0 : index
    %83 = vector.load %arg7[%c0_34, %c0_35] : memref<1x512xf32, #tpu.memory_space<vmem>>, vector<1x512xf32>
    %84 = vector.broadcast %83 : vector<1x512xf32> to vector<8x512xf32>
    %85 = arith.addf %82, %84 : vector<8x512xf32>
    %cst_36 = arith.constant 0.000000e+00 : f32
    %86 = vector.broadcast %cst_36 : f32 to vector<8x512xf32>
    %87 = arith.maximumf %85, %86 : vector<8x512xf32>
    %c0_37 = arith.constant 0 : index
    %c0_38 = arith.constant 0 : index
    %88 = vector.load %arg8[%c0_37, %c0_38] : memref<512x128xf32, #tpu.memory_space<vmem>>, vector<512x128xf32>
    %cst_39 = arith.constant dense<0.000000e+00> : vector<8x128xf32>
    %89 = tpu.matmul %87, %88, %cst_39 {dimension_numbers = #tpu.dot_dimension_numbers<[1], [0], [0], [1], [0, 0, 1, 1], [], []>} : vector<8x512xf32>, vector<512x128xf32>, vector<8x128xf32> -> vector<8x128xf32>
    %c0_40 = arith.constant 0 : index
    %c0_41 = arith.constant 0 : index
    %90 = vector.load %arg9[%c0_40, %c0_41] : memref<1x128xf32, #tpu.memory_space<vmem>>, vector<1x128xf32>
    %91 = vector.broadcast %90 : vector<1x128xf32> to vector<8x128xf32>
    %92 = arith.addf %89, %91 : vector<8x128xf32>
    %c0_42 = arith.constant 0 : index
    %c0_43 = arith.constant 0 : index
    %93 = vector.load %arg10[%c0_42, %c0_43] : memref<8x128xf32, #tpu.memory_space<vmem>>, vector<8x128xf32>
    tpu.vector_store %arg10[%c0_42, %c0_43], %92 {strides = array<i32>} : memref<8x128xf32, #tpu.memory_space<vmem>>, vector<8x128xf32>,
    return
  }
  func.func @transform_0(%arg0: i32) -> (i32, i32, i32) {
    %c0_i32 = arith.constant 0 : i32
    %c0_i32_0 = arith.constant 0 : i32
    %c0_i32_1 = arith.constant 0 : i32
    return %c0_i32, %arg0, %c0_i32_0 : i32, i32, i32
  }
  func.func @transform_1(%arg0: i32) -> (i32, i32) {
    %c0_i32 = arith.constant 0 : i32
    %c0_i32_0 = arith.constant 0 : i32
    %c0_i32_1 = arith.constant 0 : i32
    return %c0_i32, %c0_i32_0 : i32, i32
  }
  func.func @transform_2(%arg0: i32) -> (i32, i32) {
    %c0_i32 = arith.constant 0 : i32
    %c0_i32_0 = arith.constant 0 : i32
    %c0_i32_1 = arith.constant 0 : i32
    return %c0_i32, %c0_i32_0 : i32, i32
  }
  func.func @transform_3(%arg0: i32) -> (i32, i32) {
    %c0_i32 = arith.constant 0 : i32
    %c0_i32_0 = arith.constant 0 : i32
    %c0_i32_1 = arith.constant 0 : i32
    return %c0_i32, %c0_i32_0 : i32, i32
  }
  func.func @transform_4(%arg0: i32) -> (i32, i32) {
    %c0_i32 = arith.constant 0 : i32
    %c0_i32_0 = arith.constant 0 : i32
    %c0_i32_1 = arith.constant 0 : i32
    return %c0_i32, %c0_i32_0 : i32, i32
  }
  func.func @transform_5(%arg0: i32) -> (i32, i32) {
    %c0_i32 = arith.constant 0 : i32
    %c0_i32_0 = arith.constant 0 : i32
    %c0_i32_1 = arith.constant 0 : i32
    return %c0_i32, %c0_i32_0 : i32, i32
  }
  func.func @transform_6(%arg0: i32) -> (i32, i32) {
    %c0_i32 = arith.constant 0 : i32
    %c0_i32_0 = arith.constant 0 : i32
    %c0_i32_1 = arith.constant 0 : i32
    return %c0_i32, %c0_i32_0 : i32, i32
  }
  func.func @transform_7(%arg0: i32) -> (i32, i32) {
    %c0_i32 = arith.constant 0 : i32
    %c0_i32_0 = arith.constant 0 : i32
    %c0_i32_1 = arith.constant 0 : i32
    return %c0_i32, %c0_i32_0 : i32, i32
  }
  func.func @transform_8(%arg0: i32) -> (i32, i32) {
    %c0_i32 = arith.constant 0 : i32
    %c0_i32_0 = arith.constant 0 : i32
    %c0_i32_1 = arith.constant 0 : i32
    return %c0_i32, %c0_i32_0 : i32, i32
  }
  func.func @transform_9(%arg0: i32) -> (i32, i32) {
    %c0_i32 = arith.constant 0 : i32
    %c0_i32_0 = arith.constant 0 : i32
    return %arg0, %c0_i32 : i32, i32
  }
}

</mosaic_0001>

<bundles_post_ra>
// kernel: _lambda_.1
= control target key start
LH: loop header
LB: loop body
LE: loop exit
PB: predicated region body
PF: predicated region fallthrough
CT: control target
= control target key end

     0   :  { %vm1874_vm0 = vmmov 0   ;;  %vm258_vm1 = vcmask 261120   ;;  %vm1014_vm2 = vcmask 523264   ;;  %s2587_s1 = inlined_call_operand.vmem [shape: f32[256,32], index: 1, kind: input, shape index: {}]   ;;  %s2588_s0 = inlined_call_operand.vmem [shape: f32[16,8,256], index: 0, kind: input, shape index: {}]   ;;  %s2589_s3 = inlined_call_operand.vmem [shape: f32[288,64], index: 3, kind: input, shape index: {}]   ;;  %s2590_s2 = inlined_call_operand.vmem [shape: f32[1,32], index: 2, kind: input, shape index: {}]   ;;  %s2591_s5 = inlined_call_operand.vmem [shape: f32[64,512], index: 5, kind: input, shape index: {}]   ;;  %s2592_s7 = inlined_call_operand.vmem [shape: f32[512,128], index: 7, kind: input, shape index: {}]   ;;  %s2593_s4 = inlined_call_operand.vmem [shape: f32[1,64], index: 4, kind: input, shape index: {}]   ;;  %s2594_s6 = inlined_call_operand.vmem [shape: f32[1,512], index: 6, kind: input, shape index: {}]   ;;  %s2595_s8 = inlined_call_operand.vmem [shape: f32[1,128], index: 8, kind: input, shape index: {}]   ;;  %s2596_s9 = inlined_call_operand.vmem [shape: f32[8,128], index: 9, kind: output, shape index: {}]  }
   0x1   :  { %v80_v0 = vld [vmem:[%s2587_s1 + $0x80] sm:$0xff]  ;;  %v81_v1 = vld [vmem:[%s2587_s1 + $0x88] sm:$0xff]  ;;  %v82_v5 = vld [vmem:[%s2587_s1 + $0x90] sm:$0xff] }
   0x2   :  { %v64_v2 = vld [vmem:[%s2587_s1] sm:$0xff]  ;;  %v1688_v3 = vpack.c.bf16 %v81_v1, %v80_v0  ;;  %v65_v4 = vld [vmem:[%s2587_s1 + $0x8] sm:$0xff]  ;;  %v83_v6 = vld [vmem:[%s2587_s1 + $0x98] sm:$0xff] }
   0x3   :  { %v1690_v7 = vpack.c.bf16 %v65_v4, %v64_v2  ;;  %v1692_v8 = vpack.c.bf16 %v83_v6, %v82_v5  ;;  %v66_v9 = vld [vmem:[%s2587_s1 + $0x10] sm:$0xff]  ;;  %v67_v10 = vld [vmem:[%s2587_s1 + $0x18] sm:$0xff]  ;;  %v84_v11 = vld [vmem:[%s2587_s1 + $0xa0] sm:$0xff] }
   0x4   :  { %1689 = vmatprep.subr.bf16.mxu0 %v1688_v3  ;;  %v85_v12 = vld [vmem:[%s2587_s1 + $0xa8] sm:$0xff]  ;;  %v1694_v13 = vpack.c.bf16 %v67_v10, %v66_v9  ;;  %v68_v15 = vld [vmem:[%s2587_s1 + $0x20] sm:$0xff]  ;;  %v86_v17 = vld [vmem:[%s2587_s1 + $0xb0] sm:$0xff]  ;;  %v1873_v9 = vmov 0.0|0.0  }
   0x5   :  { %1691 = vmatpush3.bf16.msra.mxu0 %v1690_v7  ;;  %v1696_v14 = vpack.c.bf16 %v85_v12, %v84_v11  ;;  %v69_v16 = vld [vmem:[%s2587_s1 + $0x28] sm:$0xff]  ;;  %v87_v18 = vld [vmem:[%s2587_s1 + $0xb8] sm:$0xff]  ;;  %v70_v21 = vld [vmem:[%s2587_s1 + $0x30] sm:$0xff]  ;;  %1720 = vmatprep.subr.bf16.mxu1 %v1873_v9 }
   0x6   :  { %1693 = vmatprep.subr.bf16.mxu0 %v1692_v8  ;;  %v1698_v19 = vpack.c.bf16 %v69_v16, %v68_v15  ;;  %v1700_v20 = vpack.c.bf16 %v87_v18, %v86_v17  ;;  %v71_v22 = vld [vmem:[%s2587_s1 + $0x38] sm:$0xff]  ;;  %v88_v23 = vld [vmem:[%s2587_s1 + $0xc0] sm:$0xff]  ;;  %v89_v24 = vld [vmem:[%s2587_s1 + $0xc8] sm:$0xff] }
   0x7   :  { %v33_v25 = vld [vmem:[%s2588_s0 + $0x8] sm:$0xff]  ;;  %v1702_v26 = vpack.c.bf16 %v71_v22, %v70_v21  ;;  %v1704_v27 = vpack.c.bf16 %v89_v24, %v88_v23  ;;  %v72_v28 = vld [vmem:[%s2587_s1 + $0x40] sm:$0xff]  ;;  %v90_v30 = vld [vmem:[%s2587_s1 + $0xd0] sm:$0xff] }
   0x8   :  { %167 = vmatprep.mubr.f32.mxu0 %v33_v25  ;;  %v73_v29 = vld [vmem:[%s2587_s1 + $0x48] sm:$0xff]  ;;  %v91_v31 = vld [vmem:[%s2587_s1 + $0xd8] sm:$0xff]  ;;  %v74_v34 = vld [vmem:[%s2587_s1 + $0x50] sm:$0xff] }
   0x9   :  { %1695 = vmatpush3.bf16.msra.mxu0 %v1694_v13  ;;  %v1706_v32 = vpack.c.bf16 %v73_v29, %v72_v28  ;;  %v1708_v33 = vpack.c.bf16 %v91_v31, %v90_v30  ;;  %v75_v35 = vld [vmem:[%s2587_s1 + $0x58] sm:$0xff]  ;;  %v92_v36 = vld [vmem:[%s2587_s1 + $0xe0] sm:$0xff]  ;;  %v93_v37 = vld [vmem:[%s2587_s1 + $0xe8] sm:$0xff]  ;;  %v1875_v13 = vmov 0.0  }
   0xa   :  { %1697 = vmatprep.subr.bf16.mxu0 %v1696_v14  ;;  %v1710_v38 = vpack.c.bf16 %v75_v35, %v74_v34  ;;  %v1712_v39 = vpack.c.bf16 %v93_v37, %v92_v36  ;;  %v76_v40 = vld [vmem:[%s2587_s1 + $0x60] sm:$0xff]  ;;  %v77_v41 = vld [vmem:[%s2587_s1 + $0x68] sm:$0xff]  ;;  %v94_v42 = vld [vmem:[%s2587_s1 + $0xf0] sm:$0xff]  ;;  %1597 = vmatprep.mubr.msk.f32.mxu1 %vm1874_vm0, %v1875_v13 }
   0xb   :  { %v95_v43 = vld [vmem:[%s2587_s1 + $0xf8] sm:$0xff]  ;;  %v1714_v44 = vpack.c.bf16 %v77_v41, %v76_v40  ;;  %v78_v46 = vld [vmem:[%s2587_s1 + $0x70] sm:$0xff]  ;;  %v32_v49 = vld [vmem:[%s2588_s0] sm:$0xff] }
   0xc   :  { %v1716_v45 = vpack.c.bf16 %v95_v43, %v94_v42  ;;  %v79_v47 = vld [vmem:[%s2587_s1 + $0x78] sm:$0xff]  ;;  %v34_v51 = vld [vmem:[%s2588_s0 + $0x10] sm:$0xff]  ;;  %v37_v52 = vld [vmem:[%s2588_s0 + $0x28] sm:$0xff] }
   0xd   :  { %1699 = vmatpush3.bf16.msra.mxu0 %v1698_v19  ;;  %v1718_v48 = vpack.c.bf16 %v79_v47, %v78_v46  ;;  %v35_v50 = vld [vmem:[%s2588_s0 + $0x18] sm:$0xff]  ;;  %v36_v53 = vld [vmem:[%s2588_s0 + $0x20] sm:$0xff]  ;;  %v38_v55 = vld [vmem:[%s2588_s0 + $0x30] sm:$0xff] }
   0xe   :  { %1701 = vmatprep.subr.bf16.mxu0 %v1700_v20  ;;  %v39_v54 = vld [vmem:[%s2588_s0 + $0x38] sm:$0xff]  ;;  %v41_v56 = vld [vmem:[%s2588_s0 + $0x48] sm:$0xff]  ;;  %v40_v57 = vld [vmem:[%s2588_s0 + $0x40] sm:$0xff] }
   0xf   :  { %v43_v58 = vld [vmem:[%s2588_s0 + $0x58] sm:$0xff]  ;;  %v42_v59 = vld [vmem:[%s2588_s0 + $0x50] sm:$0xff]  ;;  %v45_v60 = vld [vmem:[%s2588_s0 + $0x68] sm:$0xff] }
  0x10   :  { %v44_v61 = vld [vmem:[%s2588_s0 + $0x60] sm:$0xff]  ;;  %v47_v62 = vld [vmem:[%s2588_s0 + $0x78] sm:$0xff]  ;;  %v46_v63 = vld [vmem:[%s2588_s0 + $0x70] sm:$0xff] }
  0x11   :  { %1703 = vmatpush3.bf16.msra.mxu0 %v1702_v26  ;;  %v49_v0 = vld [vmem:[%s2588_s0 + $0x88] sm:$0xff]  ;;  %v48_v1 = vld [vmem:[%s2588_s0 + $0x80] sm:$0xff]  ;;  %v51_v2 = vld [vmem:[%s2588_s0 + $0x98] sm:$0xff] }
  0x12   :  { %1705 = vmatprep.subr.bf16.mxu0 %v1704_v27  ;;  %v50_v3 = vld [vmem:[%s2588_s0 + $0x90] sm:$0xff]  ;;  %v53_v4 = vld [vmem:[%s2588_s0 + $0xa8] sm:$0xff]  ;;  %v52_v5 = vld [vmem:[%s2588_s0 + $0xa0] sm:$0xff] }
  0x13   :  { %v254_v6 = vld [vmem:[%s2589_s3 + $0x20] sm:$0xff]  ;;  %v255_v7 = vld [vmem:[%s2589_s3 + $0x28] sm:$0xff]  ;;  %v256_v10 = vld [vmem:[%s2589_s3 + $0x30] sm:$0xff] }
  0x14   :  { %v1721_v8 = vpack.c.bf16 %v255_v7, %v254_v6  ;;  %v257_v11 = vld [vmem:[%s2589_s3 + $0x38] sm:$0xff]  ;;  %v250_v20 = vld [vmem:[%s2589_s3] sm:$0xff]  ;;  %v251_v21 = vld [vmem:[%s2589_s3 + $0x8] sm:$0xff] }
  0x15   :  { %1707 = vmatpush3.bf16.msra.mxu0 %v1706_v32  ;;  %v1724_v12 = vpack.c.bf16 %v257_v11, %v256_v10  ;;  %v2114_v22 = vld [vmem:[%s2590_s2] ss:$0 sm:$0xff]  ;;  %v1727_v25 = vpack.c.bf16 %v251_v21, %v250_v20  ;;  %v252_v28 = vld [vmem:[%s2589_s3 + $0x10] sm:$0xff]  ;;  %v253_v29 = vld [vmem:[%s2589_s3 + $0x18] sm:$0xff] }
  0x16   :  { %1709 = vmatprep.subr.bf16.mxu0 %v1708_v33  ;;  %1722 = vmatpush3.bf16.msra.mxu1 %v1721_v8  ;;  %v1730_v32 = vpack.c.bf16 %v253_v29, %v252_v28  ;;  %v405_v35 = vld [vmem:[%s2589_s3 + $0x40] sm:$0xff]  ;;  %v406_v36 = vld [vmem:[%s2589_s3 + $0x48] sm:$0xff]  ;;  %v407_v41 = vld [vmem:[%s2589_s3 + $0x50] sm:$0xff] }
  0x17   :  { %1723 = vmatprep.subr.bf16.mxu1 %v1873_v9  ;;  %v408_v42 = vld [vmem:[%s2589_s3 + $0x58] sm:$0xff]  ;;  %v641_v20 = vld [vmem:[%s2589_s3 + $0xb0] sm:$0xff]  ;;  %v718_v28 = vld [vmem:[%s2589_s3 + $0xc8] sm:$0xff] }
  0x18   :  { %v1736_v46 = vpack.c.bf16 %v408_v42, %v407_v41  ;;  %v642_v21 = vld [vmem:[%s2589_s3 + $0xb8] sm:$0xff] }
  0x19   :  { %1711 = vmatpush3.bf16.msra.mxu0 %v1710_v38  ;;  %v1733_v38 = vpack.c.bf16 %v406_v36, %v405_v35  ;;  %v795_v35 = vld [vmem:[%s2589_s3 + $0xe0] sm:$0xff]  ;;  %v796_v36 = vld [vmem:[%s2589_s3 + $0xe8] sm:$0xff] }
  0x1a   :  { %1713 = vmatprep.subr.bf16.mxu0 %v1712_v39  ;;  %1725 = vmatpush3.bf16.msra.mxu1 %v1724_v12  ;;  %v639_v12 = vld [vmem:[%s2589_s3 + $0xa0] sm:$0xff] }
  0x1b   :  { %1726 = vmatprep.subr.bf16.mxu1 %v1873_v9 }
  0x1d   :  { %1715 = vmatpush3.bf16.msra.mxu0 %v1714_v44 }
  0x1e   :  { %1717 = vmatprep.subr.bf16.mxu0 %v1716_v45 }
  0x21   :  { %1719 = vmatpush3.bf16.msra.mxu0 %v1718_v48  ;;  %v483_v48 = vld [vmem:[%s2589_s3 + $0x60] sm:$0xff] }
  0x24   :  { %168 = vmatmul.mubr.f32.vlgmr.msra.gmra.mrb[0].mxu0 %v32_v49  ;;  %v484_v49 = vld [vmem:[%s2589_s3 + $0x68] sm:$0xff] }
  0x25   :  { %172 = vmatprep.mubr.f32.mxu0 %v35_v50 }
  0x28   :  { %173 = vmatmul.mubr.f32.gmra.mrb[2].mxu0 %v34_v51 }
  0x29   :  { %177 = vmatprep.mubr.f32.mxu0 %v37_v52 }
  0x2c   :  { %178 = vmatmul.mubr.f32.gmra.mrb[4].mxu0 %v36_v53  ;;  %v1739_v53 = vpack.c.bf16 %v484_v49, %v483_v48 }
  0x2d   :  { %182 = vmatprep.mubr.f32.mxu0 %v39_v54 }
  0x30   :  { %183 = vmatmul.mubr.f32.gmra.mrb[6].mxu0 %v38_v55  ;;  %v485_v55 = vld [vmem:[%s2589_s3 + $0x70] sm:$0xff] }
  0x31   :  { %186 = vmatprep.mubr.f32.mxu0 %v41_v56  ;;  %v486_v56 = vld [vmem:[%s2589_s3 + $0x78] sm:$0xff] }
  0x34   :  { %187 = vmatmul.mubr.f32.gmra.mrb[8].mxu0 %v40_v57 }
  0x35   :  { %191 = vmatprep.mubr.f32.mxu0 %v43_v58 }
  0x38   :  { %192 = vmatmul.mubr.f32.gmra.mrb[10].mxu0 %v42_v59 }
  0x39   :  { %196 = vmatprep.mubr.f32.mxu0 %v45_v60  ;;  %v1742_v60 = vpack.c.bf16 %v486_v56, %v485_v55  ;;  %v971_v55 = vld [vmem:[%s2591_s5 + $0x58] sm:$0xff] }
  0x3a   :  { %v975_v56 = vld [vmem:[%s2591_s5 + $0x78] sm:$0xff] }
  0x3c   :  { %197 = vmatmul.mubr.f32.gmra.mrb[12].mxu0 %v44_v61 }
  0x3d   :  { %201 = vmatprep.mubr.f32.mxu0 %v47_v62  ;;  %v561_v62 = vld [vmem:[%s2589_s3 + $0x80] sm:$0xff] }
  0x40   :  { %202 = vmatmul.mubr.f32.gmra.mrb[14].mxu0 %v46_v63  ;;  %v562_v63 = vld [vmem:[%s2589_s3 + $0x88] sm:$0xff] }
  0x41   :  { %205 = vmatprep.mubr.f32.mxu0 %v49_v0 }
  0x44   :  { %206 = vmatmul.mubr.f32.gmra.mrb[16].mxu0 %v48_v1 }
  0x45   :  { %210 = vmatprep.mubr.f32.mxu0 %v51_v2  ;;  %v1745_v2 = vpack.c.bf16 %v562_v63, %v561_v62  ;;  %v983_v62 = vld [vmem:[%s2591_s5 + $0xb8] sm:$0xff]  ;;  %v978_v63 = vld [vmem:[%s2591_s5 + $0x90] sm:$0xff] }
  0x48   :  { %211 = vmatmul.mubr.f32.gmra.mrb[18].mxu0 %v50_v3 }
  0x49   :  { %215 = vmatprep.mubr.f32.mxu0 %v53_v4  ;;  %v563_v4 = vld [vmem:[%s2589_s3 + $0x90] sm:$0xff] }
  0x4c   :  { %216 = vmatmul.mubr.f32.gmra.mrb[20].mxu0 %v52_v5  ;;  %v564_v5 = vld [vmem:[%s2589_s3 + $0x98] sm:$0xff] }
  0x4d   :  { %v1748_v10 = vpack.c.bf16 %v564_v5, %v563_v4  ;;  %v54_v4 = vld [vmem:[%s2588_s0 + $0xb0] sm:$0xff]  ;;  %v57_v5 = vld [vmem:[%s2588_s0 + $0xc8] sm:$0xff] }
  0xf7   :  { %v1426_v14 = vpop.f32.mrb[0].mxu0 }
  0xf8   :  { %v1427_v15 = vpop.f32.mrb[1].mxu0 }
  0xf9   :  { %v1428_v16 = vadd.f32 %v1427_v15, %v1426_v14  ;;  %v640_v14 = vld [vmem:[%s2589_s3 + $0xa8] sm:$0xff] }
  0xfb   :  { %v1429_v17 = vpop.f32.mrb[2].mxu0  ;;  %v170_v34 = vadd.f32 %v1428_v16, %v2114_v22 }
  0xfc   :  { %v1430_v18 = vpop.f32.mrb[3].mxu0 }
  0xfd   :  { %v1431_v19 = vadd.f32 %v1430_v18, %v1429_v17  ;;  %v241_v40 = vmax.f32 %v170_v34, 0.0  ;;  %v1751_v18 = vpack.c.bf16 %v640_v14, %v639_v12  ;;  %v964_v12 = vld [vmem:[%s2591_s5 + $0x20] sm:$0xff] }
  0xff   :  { %v175_v23 = vadd.f32 %v1431_v19, %v2114_v22  ;;  %v1432_v24 = vpop.f32.mrb[4].mxu0 }
 0x100   :  { %v1433_v26 = vpop.f32.mrb[5].mxu0 }
 0x101   :  { %v242_v27 = vmax.f32 %v175_v23, 0.0  ;;  %v1434_v30 = vadd.f32 %v1433_v26, %v1432_v24  ;;  %v1754_v26 = vpack.c.bf16 %v642_v21, %v641_v20 }
 0x103   :  { %1598 = vmatmul.mubr.msk.f32.vlgmr.msra.gmra.mrb[0].mxu1 %vm258_vm1, %v242_v27  ;;  %v1435_v31 = vpop.f32.mrb[6].mxu0  ;;  %v180_v44 = vadd.f32 %v1434_v30, %v2114_v22  ;;  %v717_v27 = vld [vmem:[%s2589_s3 + $0xc0] sm:$0xff] }
 0x104   :  { %1728 = vmatpush3.bf16.msra.mxu1 %v1727_v25  ;;  %1608 = vmatprep.mubr.msk.f32.mxu1 %vm1874_vm0, %v1875_v13  ;;  %v1436_v33 = vpop.f32.mrb[7].mxu0  ;;  %v1757_v30 = vpack.c.bf16 %v718_v28, %v717_v27  ;;  %v719_v31 = vld [vmem:[%s2589_s3 + $0xd0] sm:$0xff]  ;;  %v968_v27 = vld [vmem:[%s2591_s5 + $0x40] sm:$0xff] }
 0x105   :  { %1729 = vmatprep.subr.bf16.mxu1 %v1873_v9  ;;  %v243_v51 = vmax.f32 %v180_v44, 0.0  ;;  %v874_v44 = vld [vmem:[%s2589_s3 + $0x108] sm:$0xff]  ;;  %v972_v28 = vld [vmem:[%s2591_s5 + $0x60] sm:$0xff] }
 0x107   :  { %v1438_v37 = vpop.f32.mrb[8].mxu0 }
 0x108   :  { %1731 = vmatpush3.bf16.msra.mxu1 %v1730_v32  ;;  %v1439_v39 = vpop.f32.mrb[9].mxu0  ;;  %v720_v32 = vld [vmem:[%s2589_s3 + $0xd8] sm:$0xff] }
 0x109   :  { %1732 = vmatprep.subr.bf16.mxu1 %v1873_v9  ;;  %v1440_v43 = vadd.f32 %v1439_v39, %v1438_v37  ;;  %v1760_v34 = vpack.c.bf16 %v720_v32, %v719_v31  ;;  %v797_v39 = vld [vmem:[%s2589_s3 + $0xf0] sm:$0xff]  ;;  %v977_v31 = vld [vmem:[%s2591_s5 + $0x88] sm:$0xff] }
 0x10a   :  { %v981_v32 = vld [vmem:[%s2591_s5 + $0xa8] sm:$0xff] }
 0x10b   :  { %1609 = vmatmul.mubr.msk.f32.vlgmr.msra.gmra.mrb[2].mxu1 %vm258_vm1, %v241_v40  ;;  %v1441_v45 = vpop.f32.mrb[10].mxu0  ;;  %v189_v58 = vadd.f32 %v1440_v43, %v2114_v22  ;;  %v798_v40 = vld [vmem:[%s2589_s3 + $0xf8] sm:$0xff]  ;;  %v873_v43 = vld [vmem:[%s2589_s3 + $0x100] sm:$0xff] }
 0x10c   :  { %1734 = vmatpush3.bf16.msra.mxu1 %v1733_v38  ;;  %1619 = vmatprep.mubr.msk.f32.mxu1 %vm1874_vm0, %v1875_v13  ;;  %v1442_v47 = vpop.f32.mrb[11].mxu0  ;;  %v1763_v38 = vpack.c.bf16 %v796_v36, %v795_v35  ;;  %v1766_v42 = vpack.c.bf16 %v798_v40, %v797_v39  ;;  %v976_v35 = vld [vmem:[%s2591_s5 + $0x80] sm:$0xff]  ;;  %v989_v39 = vld [vmem:[%s2591_s5 + $0xe8] sm:$0xff]  ;;  %v63_v40 = vld [vmem:[%s2588_s0 + $0xf8] sm:$0xff] }
 0x10d   :  { %1735 = vmatprep.subr.bf16.mxu1 %v1873_v9  ;;  %v1443_v50 = vadd.f32 %v1442_v47, %v1441_v45  ;;  %v244_v0 = vmax.f32 %v189_v58, 0.0  ;;  %v876_v47 = vld [vmem:[%s2589_s3 + $0x118] sm:$0xff]  ;;  %v1794_v58 = vpack.c.bf16 %v975_v56, %v971_v55  ;;  %v980_v36 = vld [vmem:[%s2591_s5 + $0xa0] sm:$0xff] }
 0x10f   :  { %v1444_v52 = vpop.f32.mrb[12].mxu0  ;;  %v194_v7 = vadd.f32 %v1443_v50, %v2114_v22  ;;  %v963_v50 = vld [vmem:[%s2591_s5 + $0x18] sm:$0xff] }
 0x110   :  { %1737 = vmatpush3.bf16.msra.mxu1 %v1736_v46  ;;  %v1445_v54 = vpop.f32.mrb[13].mxu0  ;;  %v1769_v46 = vpack.c.bf16 %v874_v44, %v873_v43  ;;  %v62_v43 = vld [vmem:[%s2588_s0 + $0xf0] sm:$0xff]  ;;  %v988_v44 = vld [vmem:[%s2591_s5 + $0xe0] sm:$0xff] }
 0x111   :  { %1738 = vmatprep.subr.bf16.mxu1 %v1873_v9  ;;  %v1446_v57 = vadd.f32 %v1445_v54, %v1444_v52  ;;  %v245_v16 = vmax.f32 %v194_v7, 0.0  ;;  %v962_v52 = vld [vmem:[%s2591_s5 + $0x10] sm:$0xff]  ;;  %v965_v7 = vld [vmem:[%s2591_s5 + $0x28] sm:$0xff] }
 0x113   :  { %1620 = vmatmul.mubr.msk.f32.vlgmr.msra.gmra.mrb[4].mxu1 %vm258_vm1, %v243_v51  ;;  %v1447_v59 = vpop.f32.mrb[14].mxu0  ;;  %v199_v24 = vadd.f32 %v1446_v57, %v2114_v22  ;;  %v967_v51 = vld [vmem:[%s2591_s5 + $0x38] sm:$0xff]  ;;  %v970_v57 = vld [vmem:[%s2591_s5 + $0x50] sm:$0xff] }
 0x114   :  { %1740 = vmatpush3.bf16.msra.mxu1 %v1739_v53  ;;  %1630 = vmatprep.mubr.msk.f32.mxu1 %vm1874_vm0, %v1875_v13  ;;  %v1448_v61 = vpop.f32.mrb[15].mxu0  ;;  %v1790_v53 = vpack.c.bf16 %v967_v51, %v963_v50  ;;  %v974_v59 = vld [vmem:[%s2591_s5 + $0x70] sm:$0xff] }
 0x115   :  { %1741 = vmatprep.subr.bf16.mxu1 %v1873_v9  ;;  %v246_v29 = vmax.f32 %v199_v24, 0.0  ;;  %v979_v61 = vld [vmem:[%s2591_s5 + $0x98] sm:$0xff] }
 0x116   :  { %1791 = vmatprep.subr.bf16.mxu0 %v1790_v53  ;;  %v59_v24 = vld [vmem:[%s2588_s0 + $0xd8] sm:$0xff] }
 0x117   :  { %v1450_v1 = vpop.f32.mrb[16].mxu0 }
 0x118   :  { %1743 = vmatpush3.bf16.msra.mxu1 %v1742_v60  ;;  %v1451_v3 = vpop.f32.mrb[17].mxu0  ;;  %v1796_v60 = vpack.c.bf16 %v974_v59, %v970_v57 }
 0x119   :  { %1744 = vmatprep.subr.bf16.mxu1 %v1873_v9  ;;  %v1452_v6 = vadd.f32 %v1451_v3, %v1450_v1  ;;  %v982_v1 = vld [vmem:[%s2591_s5 + $0xb0] sm:$0xff]  ;;  %v55_v3 = vld [vmem:[%s2588_s0 + $0xb8] sm:$0xff] }
 0x11a   :  { %220 = vmatprep.mubr.f32.mxu0 %v55_v3 }
 0x11b   :  { %1631 = vmatmul.mubr.msk.f32.vlgmr.msra.gmra.mrb[6].mxu1 %vm258_vm1, %v244_v0  ;;  %v1453_v8 = vpop.f32.mrb[18].mxu0  ;;  %v208_v33 = vadd.f32 %v1452_v6, %v2114_v22  ;;  %v1798_v0 = vpack.c.bf16 %v983_v62, %v979_v61  ;;  %v961_v6 = vld [vmem:[%s2591_s5 + $0x8] sm:$0xff]  ;;  %221 = vmatmul.mubr.f32.gmra.mrb[22].mxu0 %v54_v4 }
 0x11c   :  { %1746 = vmatpush3.bf16.msra.mxu1 %v1745_v2  ;;  %1641 = vmatprep.mubr.msk.f32.mxu1 %vm1874_vm0, %v1875_v13  ;;  %v1454_v11 = vpop.f32.mrb[19].mxu0  ;;  %v1800_v2 = vpack.c.bf16 %v982_v1, %v978_v63 }
 0x11d   :  { %1747 = vmatprep.subr.bf16.mxu1 %v1873_v9  ;;  %v1455_v15 = vadd.f32 %v1454_v11, %v1453_v8  ;;  %v247_v37 = vmax.f32 %v208_v33, 0.0  ;;  %v1774_v8 = vpack.c.bf16 %v965_v7, %v961_v6  ;;  %224 = vmatprep.mubr.f32.mxu0 %v57_v5  ;;  %v960_v11 = vld [vmem:[%s2591_s5] sm:$0xff] }
 0x11e   :  { %v1776_v14 = vpack.c.bf16 %v964_v12, %v960_v11  ;;  %v60_v33 = vld [vmem:[%s2588_s0 + $0xe0] sm:$0xff]  ;;  %v1165_v12 = vld [vmem:[%s2592_s7 + $0x8] sm:$0xff] }
 0x11f   :  { %v1456_v17 = vpop.f32.mrb[20].mxu0  ;;  %v213_v41 = vadd.f32 %v1455_v15, %v2114_v22  ;;  %v969_v15 = vld [vmem:[%s2591_s5 + $0x48] sm:$0xff]  ;;  %v1164_v11 = vld [vmem:[%s2592_s7] sm:$0xff] }
 0x120   :  { %1749 = vmatpush3.bf16.msra.mxu1 %v1748_v10  ;;  %v1457_v19 = vpop.f32.mrb[21].mxu0  ;;  %v56_v10 = vld [vmem:[%s2588_s0 + $0xc0] sm:$0xff] }
 0x121   :  { %1750 = vmatprep.subr.bf16.mxu1 %v1873_v9  ;;  %v1458_v23 = vadd.f32 %v1457_v19, %v1456_v17  ;;  %v248_v45 = vmax.f32 %v213_v41, 0.0  ;;  %225 = vmatmul.mubr.f32.gmra.mrb[24].mxu0 %v56_v10  ;;  %v987_v17 = vld [vmem:[%s2591_s5 + $0xd8] sm:$0xff]  ;;  %v986_v19 = vld [vmem:[%s2591_s5 + $0xd0] sm:$0xff]  ;;  %v1390_v10 = vld [vmem:[%s2593_s4] ss:$0 sm:$0xff] }
 0x122   :  { %228 = vmatprep.mubr.f32.mxu0 %v59_v24  ;;  %v1808_v24 = vpack.c.bf16 %v1165_v12, %v1164_v11 }
 0x123   :  { %1642 = vmatmul.mubr.msk.f32.vlgmr.msra.gmra.mrb[8].mxu1 %vm258_vm1, %v245_v16  ;;  %v218_v25 = vadd.f32 %v1458_v23, %v2114_v22  ;;  %v875_v22 = vld [vmem:[%s2589_s3 + $0x110] sm:$0xff]  ;;  %v973_v16 = vld [vmem:[%s2591_s5 + $0x68] sm:$0xff] }
 0x124   :  { %1752 = vmatpush3.bf16.msra.mxu1 %v1751_v18  ;;  %1652 = vmatprep.mubr.msk.f32.mxu1 %vm1874_vm0, %v1875_v13  ;;  %v1772_v48 = vpack.c.bf16 %v876_v47, %v875_v22  ;;  %v991_v18 = vld [vmem:[%s2591_s5 + $0xf8] sm:$0xff]  ;;  %v1778_v20 = vpack.c.bf16 %v973_v16, %v969_v15  ;;  %v990_v23 = vld [vmem:[%s2591_s5 + $0xf0] sm:$0xff]  ;;  %v1181_v22 = vld [vmem:[%s2592_s7 + $0x88] sm:$0xff] }
 0x125   :  { %1753 = vmatprep.subr.bf16.mxu1 %v1873_v9  ;;  %v249_v49 = vmax.f32 %v218_v25, 0.0  ;;  %v1802_v21 = vpack.c.bf16 %v991_v18, %v987_v17  ;;  %v58_v25 = vld [vmem:[%s2588_s0 + $0xd0] sm:$0xff]  ;;  %v1212_v47 = vld [vmem:[%s2592_s7 + $0x180] sm:$0xff]  ;;  %v1197_v17 = vld [vmem:[%s2592_s7 + $0x108] sm:$0xff] }
 0x126   :  { %229 = vmatmul.mubr.f32.gmra.mrb[26].mxu0 %v58_v25  ;;  %v1196_v16 = vld [vmem:[%s2592_s7 + $0x100] sm:$0xff]  ;;  %v1182_v18 = vld [vmem:[%s2592_s7 + $0x90] sm:$0xff] }
 0x127   :  { %v1840_v25 = vpack.c.bf16 %v1197_v17, %v1196_v16  ;;  %v1192_v16 = vld [vmem:[%s2592_s7 + $0xe0] sm:$0xff]  ;;  %v1193_v17 = vld [vmem:[%s2592_s7 + $0xe8] sm:$0xff] }
 0x128   :  { %1755 = vmatpush3.bf16.msra.mxu1 %v1754_v26  ;;  %v1804_v26 = vpack.c.bf16 %v990_v23, %v986_v19  ;;  %v1183_v19 = vld [vmem:[%s2592_s7 + $0x98] sm:$0xff] }
 0x129   :  { %1756 = vmatprep.subr.bf16.mxu1 %v1873_v9 }
 0x12b   :  { %1653 = vmatmul.mubr.msk.f32.vlgmr.msra.gmra.mrb[10].mxu1 %vm258_vm1, %v246_v29  ;;  %v61_v29 = vld [vmem:[%s2588_s0 + $0xe8] sm:$0xff] }
 0x12c   :  { %1758 = vmatpush3.bf16.msra.mxu1 %v1757_v30  ;;  %1663 = vmatprep.mubr.msk.f32.mxu1 %vm1874_vm0, %v1875_v13  ;;  %v1780_v30 = vpack.c.bf16 %v972_v28, %v968_v27  ;;  %v1167_v27 = vld [vmem:[%s2592_s7 + $0x18] sm:$0xff] }
 0x12d   :  { %1759 = vmatprep.subr.bf16.mxu1 %v1873_v9  ;;  %232 = vmatprep.mubr.f32.mxu0 %v61_v29  ;;  %v1810_v29 = vpack.c.bf16 %v1183_v19, %v1182_v18  ;;  %v1224_v18 = vld [vmem:[%s2592_s7 + $0x1e0] sm:$0xff]  ;;  %v1225_v19 = vld [vmem:[%s2592_s7 + $0x1e8] sm:$0xff] }
 0x12e   :  { %233 = vmatmul.mubr.f32.gmra.mrb[28].mxu0 %v60_v33  ;;  %v1184_v33 = vld [vmem:[%s2592_s7 + $0xa0] sm:$0xff] }
 0x12f   :  { %236 = vmatprep.mubr.f32.mxu0 %v63_v40  ;;  %v1169_v40 = vld [vmem:[%s2592_s7 + $0x28] sm:$0xff] }
 0x130   :  { %1761 = vmatpush3.bf16.msra.mxu1 %v1760_v34  ;;  %v1782_v34 = vpack.c.bf16 %v981_v32, %v977_v31  ;;  %v1198_v31 = vld [vmem:[%s2592_s7 + $0x110] sm:$0xff]  ;;  %v1199_v32 = vld [vmem:[%s2592_s7 + $0x118] sm:$0xff] }
 0x131   :  { %1762 = vmatprep.subr.bf16.mxu1 %v1873_v9 }
 0x132   :  { %237 = vmatmul.mubr.f32.gmra.mrb[30].mxu0 %v62_v43  ;;  %v1200_v43 = vld [vmem:[%s2592_s7 + $0x120] sm:$0xff] }
 0x133   :  { %1664 = vmatmul.mubr.msk.f32.vlgmr.msra.gmra.mrb[12].mxu1 %vm258_vm1, %v247_v37  ;;  %v1784_v37 = vpack.c.bf16 %v980_v36, %v976_v35  ;;  %1153 = vmatprep.mubr.f32.mxu0 %v1875_v13  ;;  %v1216_v35 = vld [vmem:[%s2592_s7 + $0x1a0] sm:$0xff]  ;;  %v1217_v36 = vld [vmem:[%s2592_s7 + $0x1a8] sm:$0xff] }
 0x134   :  { %1764 = vmatpush3.bf16.msra.mxu1 %v1763_v38  ;;  %1674 = vmatprep.mubr.msk.f32.mxu1 %vm1874_vm0, %v1875_v13  ;;  %v985_v38 = vld [vmem:[%s2591_s5 + $0xc8] sm:$0xff] }
 0x135   :  { %1765 = vmatprep.subr.bf16.mxu1 %v1873_v9  ;;  %v1786_v41 = vpack.c.bf16 %v989_v39, %v985_v38  ;;  %v1844_v38 = vpack.c.bf16 %v1199_v32, %v1198_v31  ;;  %v1168_v39 = vld [vmem:[%s2592_s7 + $0x20] sm:$0xff] }
 0x138   :  { %1767 = vmatpush3.bf16.msra.mxu1 %v1766_v42  ;;  %v984_v42 = vld [vmem:[%s2591_s5 + $0xc0] sm:$0xff] }
 0x139   :  { %1768 = vmatprep.subr.bf16.mxu1 %v1873_v9 }
 0x13b   :  { %1675 = vmatmul.mubr.msk.f32.vlgmr.msra.gmra.mrb[14].mxu1 %vm258_vm1, %v248_v45  ;;  %v1788_v45 = vpack.c.bf16 %v988_v44, %v984_v42  ;;  %v1846_v42 = vpack.c.bf16 %v1217_v36, %v1216_v35  ;;  %v1201_v44 = vld [vmem:[%s2592_s7 + $0x128] sm:$0xff]  ;;  %v1208_v36 = vld [vmem:[%s2592_s7 + $0x160] sm:$0xff] }
 0x13c   :  { %1770 = vmatpush3.bf16.msra.mxu1 %v1769_v46  ;;  %1685 = vmatprep.mubr.msk.f32.mxu1 %vm1874_vm0, %v1875_v13  ;;  %v1180_v46 = vld [vmem:[%s2592_s7 + $0x80] sm:$0xff]  ;;  %v1177_v35 = vld [vmem:[%s2592_s7 + $0x68] sm:$0xff] }
 0x13d   :  { %1771 = vmatprep.subr.bf16.mxu1 %v1873_v9  ;;  %v966_v9 = vld [vmem:[%s2591_s5 + $0x30] sm:$0xff] }
 0x13e   :  { %v1792_v54 = vpack.c.bf16 %v966_v9, %v962_v52 }
 0x140   :  { %1773 = vmatpush3.bf16.msra.mxu1 %v1772_v48  ;;  %1793 = vmatpush1.bf16.msra.mxu0 %v1792_v54  ;;  %v1806_v48 = vpack.c.bf16 %v1181_v22, %v1180_v46  ;;  %v1187_v46 = vld [vmem:[%s2592_s7 + $0xb8] sm:$0xff]  ;;  %v1218_v22 = vld [vmem:[%s2592_s7 + $0x1b0] sm:$0xff] }
 0x141   :  { %1795 = vmatprep.subr.bf16.mxu0 %v1794_v58  ;;  %1775 = vmatprep.subr.bf16.mxu1 %v1774_v8 }
 0x143   :  { %1686 = vmatmul.mubr.msk.f32.vlgmr.msra.gmra.mrb[16].mxu1 %vm258_vm1, %v249_v49  ;;  %v1213_v49 = vld [vmem:[%s2592_s7 + $0x188] sm:$0xff] }
 0x144   :  { %1082 = vmatprep.mubr.f32.mxu1 %v1875_v13  ;;  %1797 = vmatpush1.bf16.msra.mxu0 %v1796_v60  ;;  %v1838_v50 = vpack.c.bf16 %v1213_v49, %v1212_v47  ;;  %v1219_v47 = vld [vmem:[%s2592_s7 + $0x1b8] sm:$0xff]  ;;  %v1848_v49 = vpack.c.bf16 %v1201_v44, %v1200_v43  ;;  %v1226_v43 = vld [vmem:[%s2592_s7 + $0x1f0] sm:$0xff] }
 0x145   :  { %1799 = vmatprep.subr.bf16.mxu0 %v1798_v0  ;;  %1777 = vmatpush1.bf16.msra.mxu1 %v1776_v14 }
 0x146   :  { %1779 = vmatprep.subr.bf16.mxu1 %v1778_v20  ;;  %v1214_v20 = vld [vmem:[%s2592_s7 + $0x190] sm:$0xff] }
 0x148   :  { %1801 = vmatpush1.bf16.msra.mxu0 %v1800_v2 }
 0x149   :  { %1803 = vmatprep.subr.bf16.mxu0 %v1802_v21  ;;  %1781 = vmatpush1.bf16.msra.mxu1 %v1780_v30  ;;  %v1215_v21 = vld [vmem:[%s2592_s7 + $0x198] sm:$0xff] }
 0x14a   :  { %1783 = vmatprep.subr.bf16.mxu1 %v1782_v34  ;;  %v1842_v30 = vpack.c.bf16 %v1215_v21, %v1214_v20  ;;  %v1185_v34 = vld [vmem:[%s2592_s7 + $0xa8] sm:$0xff] }
 0x14c   :  { %1805 = vmatpush1.bf16.msra.mxu0 %v1804_v26  ;;  %v1166_v26 = vld [vmem:[%s2592_s7 + $0x10] sm:$0xff] }
 0x14d   :  { %1785 = vmatpush1.bf16.msra.mxu1 %v1784_v37  ;;  %1839 = vmatprep.subr.bf16.mxu0 %v1838_v50  ;;  %v1812_v37 = vpack.c.bf16 %v1167_v27, %v1166_v26  ;;  %v1170_v50 = vld [vmem:[%s2592_s7 + $0x30] sm:$0xff] }
 0x14e   :  { %1787 = vmatprep.subr.bf16.mxu1 %v1786_v41  ;;  %v1814_v41 = vpack.c.bf16 %v1185_v34, %v1184_v33  ;;  %v1176_v34 = vld [vmem:[%s2592_s7 + $0x60] sm:$0xff] }
 0x151   :  { %1789 = vmatpush1.bf16.msra.mxu1 %v1788_v45  ;;  %v1186_v45 = vld [vmem:[%s2592_s7 + $0xb0] sm:$0xff] }
 0x152   :  { %1807 = vmatprep.subr.bf16.mxu1 %v1806_v48  ;;  %v1816_v48 = vpack.c.bf16 %v1169_v40, %v1168_v39  ;;  %v1209_v39 = vld [vmem:[%s2592_s7 + $0x168] sm:$0xff] }
 0x153   :  { %v1864_v40 = vpack.c.bf16 %v1209_v39, %v1208_v36 }
 0x1d6   :  { %v328_v13 = vpop.f32.mrb[0].mxu1 }
 0x1d7   :  { %v1599_v51 = vpop.f32.mrb[1].mxu1 }
 0x1d8   :  { %v1818_v51 = vpack.c.bf16 %v1187_v46, %v1186_v45  ;;  %v1227_v45 = vld [vmem:[%s2592_s7 + $0x1f8] sm:$0xff]  ;;  %v1178_v46 = vld [vmem:[%s2592_s7 + $0x70] sm:$0xff] }
 0x1de   :  { %v401_v52 = vpop.f32.mrb[2].mxu1 }
 0x1df   :  { %v402_v53 = vadd.f32 %v401_v52, %v328_v13  ;;  %v1610_v9 = vpop.f32.mrb[3].mxu1  ;;  %v1171_v13 = vld [vmem:[%s2592_s7 + $0x38] sm:$0xff]  ;;  %v1850_v52 = vpack.c.bf16 %v1219_v47, %v1218_v22  ;;  %v1866_v47 = vpack.c.bf16 %v1227_v45, %v1226_v43 }
 0x1e0   :  { %v1203_v9 = vld [vmem:[%s2592_s7 + $0x138] sm:$0xff] }
 0x1e1   :  { %v1179_v22 = vld [vmem:[%s2592_s7 + $0x78] sm:$0xff] }
 0x1e6   :  { %v478_v54 = vpop.f32.mrb[4].mxu1 }
 0x1e7   :  { %v482_v55 = vadd.f32 %v478_v54, %v402_v53  ;;  %v1621_v56 = vpop.f32.mrb[5].mxu1  ;;  %v1202_v53 = vld [vmem:[%s2592_s7 + $0x130] sm:$0xff]  ;;  %v1188_v54 = vld [vmem:[%s2592_s7 + $0xc0] sm:$0xff] }
 0x1e8   :  { %v1220_v56 = vld [vmem:[%s2592_s7 + $0x1c0] sm:$0xff] }
 0x1ee   :  { %v556_v57 = vpop.f32.mrb[6].mxu1 }
 0x1ef   :  { %v560_v58 = vadd.f32 %v556_v57, %v482_v55  ;;  %v1632_v59 = vpop.f32.mrb[7].mxu1  ;;  %v1189_v55 = vld [vmem:[%s2592_s7 + $0xc8] sm:$0xff] }
 0x1f0   :  { %v1221_v57 = vld [vmem:[%s2592_s7 + $0x1c8] sm:$0xff]  ;;  %v1852_v59 = vpack.c.bf16 %v1203_v9, %v1202_v53 }
 0x1f6   :  { %v634_v60 = vpop.f32.mrb[8].mxu1 }
 0x1f7   :  { %v638_v61 = vadd.f32 %v634_v60, %v560_v58  ;;  %v1643_v62 = vpop.f32.mrb[9].mxu1  ;;  %v1820_v58 = vpack.c.bf16 %v1171_v13, %v1170_v50  ;;  %v1172_v60 = vld [vmem:[%s2592_s7 + $0x40] sm:$0xff]  ;;  %v1211_v50 = vld [vmem:[%s2592_s7 + $0x178] sm:$0xff] }
 0x1f8   :  { %v1822_v62 = vpack.c.bf16 %v1189_v55, %v1188_v54  ;;  %v992_v54 = vld [vmem:[%s2594_s6] sm:$0xf] }
 0x1fe   :  { %v712_v63 = vpop.f32.mrb[10].mxu1 }
 0x1ff   :  { %v716_v0 = vadd.f32 %v712_v63, %v638_v61  ;;  %v1654_v1 = vpop.f32.mrb[11].mxu1  ;;  %v1173_v61 = vld [vmem:[%s2592_s7 + $0x48] sm:$0xff]  ;;  %v1854_v63 = vpack.c.bf16 %v1221_v57, %v1220_v56 }
 0x200   :  { %v1205_v1 = vld [vmem:[%s2592_s7 + $0x148] sm:$0xff] }
 0x206   :  { %v790_v2 = vpop.f32.mrb[12].mxu1 }
 0x207   :  { %v794_v3 = vadd.f32 %v790_v2, %v716_v0  ;;  %v1665_v4 = vpop.f32.mrb[13].mxu1  ;;  %v1204_v0 = vld [vmem:[%s2592_s7 + $0x140] sm:$0xff]  ;;  %v1190_v2 = vld [vmem:[%s2592_s7 + $0xd0] sm:$0xff] }
 0x208   :  { %v1222_v4 = vld [vmem:[%s2592_s7 + $0x1d0] sm:$0xff] }
 0x20e   :  { %v868_v5 = vpop.f32.mrb[14].mxu1 }
 0x20f   :  { %v872_v6 = vadd.f32 %v868_v5, %v794_v3  ;;  %v1676_v7 = vpop.f32.mrb[15].mxu1  ;;  %v1191_v3 = vld [vmem:[%s2592_s7 + $0xd8] sm:$0xff] }
 0x210   :  { %v1223_v5 = vld [vmem:[%s2592_s7 + $0x1d8] sm:$0xff]  ;;  %v1856_v7 = vpack.c.bf16 %v1205_v1, %v1204_v0  ;;  %v1826_v11 = vpack.c.bf16 %v1191_v3, %v1190_v2 }
 0x211   :  { %v1858_v12 = vpack.c.bf16 %v1223_v5, %v1222_v4 }
 0x216   :  { %v946_v8 = vpop.f32.mrb[16].mxu1 }
 0x217   :  { %v950_v14 = vadd.f32 %v946_v8, %v872_v6  ;;  %v1687_v15 = vpop.f32.mrb[17].mxu1  ;;  %v1824_v6 = vpack.c.bf16 %v1173_v61, %v1172_v60  ;;  %v1174_v8 = vld [vmem:[%s2592_s7 + $0x50] sm:$0xff] }
 0x218   :  { %v1207_v15 = vld [vmem:[%s2592_s7 + $0x158] sm:$0xff] }
 0x219   :  { %v958_v23 = vadd.f32 %v1390_v10, %v950_v14  ;;  %v1175_v10 = vld [vmem:[%s2592_s7 + $0x58] sm:$0xff]  ;;  %v1206_v14 = vld [vmem:[%s2592_s7 + $0x150] sm:$0xff] }
 0x21a   :  { %v1828_v20 = vpack.c.bf16 %v1175_v10, %v1174_v8  ;;  %v1860_v21 = vpack.c.bf16 %v1207_v15, %v1206_v14 }
 0x21b   :  { %v959_v28 = vmax.f32 %v958_v23, 0.0  ;;  %v1830_v23 = vpack.c.bf16 %v1193_v17, %v1192_v16 }
 0x21d   :  { %1391 = vmatmul.mubr.msk.f32.vlgmr.msra.gmra.mrb[18].mxu1 %vm1014_vm2, %v959_v28  ;;  %1392 = vmatmul.mubr.msk.f32.vlgmr.msra.gmra.mrb[32].mxu0 %vm1014_vm2, %v959_v28 }
 0x21e   :  { %1809 = vmatpush3.bf16.msra.mxu1 %v1808_v24  ;;  %1841 = vmatpush3.bf16.msra.mxu0 %v1840_v25  ;;  %v1862_v24 = vpack.c.bf16 %v1225_v19, %v1224_v18  ;;  %v1459_v25 = vpop.f32.mrb[22].mxu0 }
 0x21f   :  { %1811 = vmatprep.subr.bf16.mxu1 %v1810_v29  ;;  %1843 = vmatprep.subr.bf16.mxu0 %v1842_v30  ;;  %v1460_v26 = vpop.f32.mrb[23].mxu0 }
 0x220   :  { %v1462_v27 = vpop.f32.mrb[24].mxu0 }
 0x221   :  { %v1463_v28 = vpop.f32.mrb[25].mxu0 }
 0x222   :  { %1813 = vmatpush3.bf16.msra.mxu1 %v1812_v37  ;;  %1845 = vmatpush3.bf16.msra.mxu0 %v1844_v38  ;;  %v1465_v29 = vpop.f32.mrb[26].mxu0  ;;  %v1832_v38 = vpack.c.bf16 %v1177_v35, %v1176_v34 }
 0x223   :  { %1815 = vmatprep.subr.bf16.mxu1 %v1814_v41  ;;  %1847 = vmatprep.subr.bf16.mxu0 %v1846_v42  ;;  %v1466_v30 = vpop.f32.mrb[27].mxu0  ;;  %v1194_v41 = vld [vmem:[%s2592_s7 + $0xf0] sm:$0xff]  ;;  %v1195_v42 = vld [vmem:[%s2592_s7 + $0xf8] sm:$0xff] }
 0x224   :  { %v1468_v31 = vpop.f32.mrb[28].mxu0  ;;  %v1834_v44 = vpack.c.bf16 %v1195_v42, %v1194_v41 }
 0x225   :  { %v1469_v32 = vpop.f32.mrb[29].mxu0 }
 0x226   :  { %1817 = vmatpush3.bf16.msra.mxu1 %v1816_v48  ;;  %1849 = vmatpush3.bf16.msra.mxu0 %v1848_v49  ;;  %v1471_v33 = vpop.f32.mrb[30].mxu0  ;;  %v1836_v48 = vpack.c.bf16 %v1179_v22, %v1178_v46  ;;  %v1210_v49 = vld [vmem:[%s2592_s7 + $0x170] sm:$0xff] }
 0x227   :  { %1819 = vmatprep.subr.bf16.mxu1 %v1818_v51  ;;  %1851 = vmatprep.subr.bf16.mxu0 %v1850_v52  ;;  %v1472_v37 = vpop.f32.mrb[31].mxu0  ;;  %v1868_v13 = vpack.c.bf16 %v1211_v50, %v1210_v49  ;;  %v994_v51 = vlaneseq }
 0x229   :  { %v995_v52 = vshrl.u32 %v994_v51, 7 }
 0x22a   :  { %1821 = vmatpush3.bf16.msra.mxu1 %v1820_v58  ;;  %1853 = vmatpush3.bf16.msra.mxu0 %v1852_v59 }
 0x22b   :  { %1823 = vmatprep.subr.bf16.mxu1 %v1822_v62  ;;  %1855 = vmatprep.subr.bf16.mxu0 %v1854_v63  ;;  %v996_v53 = vsub.s32 0, %v995_v52  ;;  %v1004_v9 = vsub.s32 2, %v995_v52  ;;  %v1000_v55 = vsub.s32 1, %v995_v52  ;;  %v1008_v56 = vsub.s32 3, %v995_v52 }
 0x22d   :  { %v997_v57 = vrot.slane %v992_v54, %v996_v53  ;;  %v1005_v58 = vrot.slane %v992_v54, %v1004_v9  ;;  %v1001_v59 = vrot.slane %v992_v54, %v1000_v55  ;;  %v1009_v60 = vrot.slane %v992_v54, %v1008_v56 }
 0x22e   :  { %1825 = vmatpush3.bf16.msra.mxu1 %v1824_v6  ;;  %1857 = vmatpush3.bf16.msra.mxu0 %v1856_v7 }
 0x22f   :  { %1827 = vmatprep.subr.bf16.mxu1 %v1826_v11  ;;  %1859 = vmatprep.subr.bf16.mxu0 %v1858_v12  ;;  %v1393_v12 = vld [vmem:[%s2595_s8] ss:$0 sm:$0xff] }
 0x232   :  { %1829 = vmatpush3.bf16.msra.mxu1 %v1828_v20  ;;  %1861 = vmatpush3.bf16.msra.mxu0 %v1860_v21 }
 0x233   :  { %1831 = vmatprep.subr.bf16.mxu1 %v1830_v23  ;;  %1863 = vmatprep.subr.bf16.mxu0 %v1862_v24 }
 0x236   :  { %1833 = vmatpush3.bf16.msra.mxu1 %v1832_v38  ;;  %1865 = vmatpush3.bf16.msra.mxu0 %v1864_v40 }
 0x237   :  { %1835 = vmatprep.subr.bf16.mxu1 %v1834_v44  ;;  %1867 = vmatprep.subr.bf16.mxu0 %v1866_v47 }
 0x23a   :  { %1837 = vmatpush3.bf16.msra.mxu1 %v1836_v48  ;;  %1869 = vmatpush3.bf16.msra.mxu0 %v1868_v13 }
 0x2f0   :  { %v1084_v61 = vpop.f32.mrb[18].mxu1  ;;  %v1155_v62 = vpop.f32.mrb[32].mxu0 }
 0x2f1   :  { %v1085_v63 = vadd.f32 %v1084_v61, %v997_v57  ;;  %v1156_v0 = vadd.f32 %v1155_v62, %v1005_v58  ;;  %v1086_v1 = vpop.f32.mrb[19].mxu1  ;;  %v1157_v2 = vpop.f32.mrb[33].mxu0 }
 0x2f2   :  { %v1087_v3 = vadd.f32 %v1086_v1, %v1001_v59  ;;  %v1158_v4 = vadd.f32 %v1157_v2, %v1009_v60 }
 0x2f3   :  { %v1160_v7 = vmax.f32 %v1085_v63, 0.0  ;;  %v1162_v8 = vmax.f32 %v1156_v0, 0.0 }
 0x2f4   :  { %v1161_v5 = vmax.f32 %v1087_v3, 0.0  ;;  %v1163_v6 = vmax.f32 %v1158_v4, 0.0 }
 0x2f6   :  { %1299 = vmatprep.mubr.f32.mxu1 %v1161_v5  ;;  %1369 = vmatprep.mubr.f32.mxu0 %v1163_v6 }
 0x2f7   :  { %1300 = vmatmul.mubr.f32.vlgmr.msra.gmra.mrb[20].mxu1 %v1160_v7  ;;  %1370 = vmatmul.mubr.f32.vlgmr.msra.gmra.mrb[34].mxu0 %v1162_v8 }
 0x3ca   :  { %v1551_v10 = vpop.f32.mrb[20].mxu1  ;;  %v1586_v11 = vpop.f32.mrb[34].mxu0 }
 0x3cb   :  { %v1552_v14 = vpop.f32.mrb[21].mxu1  ;;  %v1587_v15 = vpop.f32.mrb[35].mxu0 }
 0x3cc   :  { %v1553_v16 = vadd.f32 %v1552_v14, %v1551_v10  ;;  %v1588_v17 = vadd.f32 %v1587_v15, %v1586_v11 }
 0x3ce   :  { %v1302_v18 = vadd.f32 %v1553_v16, %v1393_v12 }
 0x3d0   :  { %v1372_v19 = vadd.f32 %v1588_v17, %v1302_v18 }
 0x3d2   :  { %1375 = vst [vmem:[%s2596_s9] sm:$0xff] %v1372_v19 }

</bundles_post_ra>
